<compile_context>
chip_gen: v5e
topology: v5e:2x2
jax: 0.10.0
libtpu: 0.0.40
codegen_flags: <defaults>
</compile_context>

<pallas_src>
import functools

import jax
import jax.numpy as jnp
from jax.experimental import pallas as pl
from jax.experimental.pallas import tpu as pltpu


# ----------------------------- kernel body ---------------------------------

def _attention_kernel(g_ref, x_ref, wg_ref, wx_ref, wpsi_ref,
                      bsum_ref, bpsi_ref, out_ref):
    # g_ref:    (1, F_g, TP)   x_ref:  (1, F_l, TP)    lane axis = pixels
    # wg_ref:   (F_int, F_g)   wx_ref: (F_int, F_l)    folded conv+BN weights
    # wpsi_ref: (1, F_int)     bsum_ref: (F_int, 1)    fused bg + bx
    # bpsi_ref: (1,) scalar in SMEM
    # out_ref:  (1, F_l, TP)
    g = g_ref[0]                                        # (F_g, TP)
    x = x_ref[0]                                        # (F_l, TP)

    # relu(Wg@g + Wx@x + (bg + bx)) with f32 accumulation on the MXU.
    h = jnp.dot(wg_ref[...], g, preferred_element_type=jnp.float32)
    h = h + jnp.dot(wx_ref[...], x, preferred_element_type=jnp.float32)
    h = jnp.maximum(h + bsum_ref[...], 0.0)             # (F_int, TP), f32

    # psi projection: lane-dense (1, F_int) @ (F_int, TP) -> (1, TP).
    p = jnp.dot(wpsi_ref[...], h, preferred_element_type=jnp.float32) + bpsi_ref[0]
    psi = jax.nn.sigmoid(p)                              # (1, TP), f32 gate

    # Gate x in f32 (keep the sigmoid at full precision), cast once on store.
    out_ref[0] = (x.astype(jnp.float32) * psi).astype(out_ref.dtype)


# ----------------------------- host helpers --------------------------------

def _fold_bn(w, b, gamma, beta, mean, var, eps=1e-5):
    """Fold eval-mode BatchNorm into a 1x1 conv expressed as (C_in, C_out) matmul."""
    scale = gamma / jnp.sqrt(var + eps)                  # (C_out,)
    w_f = w * scale[None, :]                             # (C_in, C_out)
    b_f = (b - mean) * scale + beta                      # (C_out,)
    return w_f, b_f


def _round_up(v, m):
    return (v + m - 1) // m * m


def _query_vmem_capacity_bytes():
    """Per-core VMEM capacity; conservative 64 MiB (v7x) fallback."""
    try:
        info = pltpu.get_tpu_info()
        cap = getattr(info, "vmem_capacity_bytes", None)
        if cap and int(cap) >= (16 << 20):
            return int(cap)
    except Exception:
        pass
    return 64 << 20


_VMEM_CAP_BYTES = _query_vmem_capacity_bytes()


# ----------------------------- wrapper --------------------------------------

@functools.partial(jax.jit, static_argnames=("target_block_bytes",))
def attention_block_pallas(g, x, params, target_block_bytes=3 * 1024 * 1024):
    """g: (N, F_g, H, W)  x: (N, F_l, H, W)  -> (N, F_l, H, W)."""
    N, F_g, H, W = g.shape
    _, F_l, _, _ = x.shape
    HW = H * W

    wg, bg = _fold_bn(params["wg"], params["bg"], params["bn_g_gamma"],
                      params["bn_g_beta"], params["bn_g_mean"], params["bn_g_var"])
    wx, bx = _fold_bn(params["wx"], params["bx"], params["bn_x_gamma"],
                      params["bn_x_beta"], params["bn_x_mean"], params["bn_x_var"])
    wpsi, bpsi = _fold_bn(params["wpsi"], params["bpsi"], params["bn_p_gamma"],
                          params["bn_p_beta"], params["bn_p_mean"], params["bn_p_var"])
    F_int = wg.shape[1]

    itemsize = jnp.dtype(x.dtype).itemsize
    stream_pp = (F_g + 2 * F_l) * itemsize               # streamed bytes / pixel (g + x + out)

    # ---- pixel-tile size: by bytes, clamped by per-chip VMEM budget --------
    vmem_cap = _VMEM_CAP_BYTES
    stream_budget = int(vmem_cap * 0.45)                 # double-buffered streams
    cap_from_vmem = max(128, (stream_budget // (2 * stream_pp)) // 128 * 128)
    tp_from_bytes = max(128, (target_block_bytes // (max(F_g, F_l) * itemsize)) // 128 * 128)
    tp_cap = min(cap_from_vmem, tp_from_bytes)

    if HW % 128 != 0 and HW <= tp_cap:
        # Ragged HW that fits in one block: full-extent pixel block, no pad/slice.
        tp = HW
        HW_pad = HW
    else:
        HW_pad = _round_up(HW, 128)                      # pad to 128, not to tp
        tp = min(tp_cap, HW_pad)
        # v7x: make sure both TensorCores get at least one grid point.
        if N * pl.cdiv(HW_pad, tp) < 2 and HW_pad >= 256:
            tp = max(128, _round_up(pl.cdiv(HW_pad, 2), 128))

    num_tiles = pl.cdiv(HW_pad, tp)                      # last block may be ragged
    grid = (N, num_tiles)

    # ---- channel-major layout: free reshape, no transpose round-trip -------
    g_r = g.reshape(N, F_g, HW)
    x_r = x.reshape(N, F_l, HW)
    if HW_pad != HW:
        pad = ((0, 0), (0, 0), (0, HW_pad - HW))
        g_r = jnp.pad(g_r, pad)
        x_r = jnp.pad(x_r, pad)

    # Weights as (C_out, C_in); cast to activation dtype so bf16 hits MXU natively.
    wg_t = wg.T.astype(g.dtype)                          # (F_int, F_g)
    wx_t = wx.T.astype(x.dtype)                          # (F_int, F_l)
    wpsi_t = wpsi.T.astype(jnp.float32)                  # (1, F_int)
    bsum = (bg + bx).astype(jnp.float32).reshape(F_int, 1)   # fused branch biases
    bpsi_s = bpsi.astype(jnp.float32).reshape(1)             # scalar -> SMEM

    # ---- VMEM limit: double-buffered streams + double-buffered weights -----
    weight_bytes = F_int * (F_g + F_l) * itemsize + 2 * F_int * 4 + 4
    need = 2 * stream_pp * tp + 2 * weight_bytes + (6 << 20)
    hard_cap = max(32 << 20, vmem_cap - (14 << 20))      # ~50 MiB on v7x, ~114 MiB on v5e/v6e
    vmem_limit = int(min(max(need, 32 << 20), hard_cap))

    out_r = pl.pallas_call(
        _attention_kernel,
        out_shape=jax.ShapeDtypeStruct((N, F_l, HW_pad), x.dtype),
        grid=grid,
        in_specs=[
            pl.BlockSpec((1, F_g, tp), lambda n, p: (n, 0, p)),    # g pixel tile
            pl.BlockSpec((1, F_l, tp), lambda n, p: (n, 0, p)),    # x pixel tile
            pl.BlockSpec((F_int, F_g), lambda n, p: (0, 0)),       # Wg^T (resident)
            pl.BlockSpec((F_int, F_l), lambda n, p: (0, 0)),       # Wx^T (resident)
            pl.BlockSpec((1, F_int), lambda n, p: (0, 0)),         # Wpsi^T (resident)
            pl.BlockSpec((F_int, 1), lambda n, p: (0, 0)),         # bg + bx
            pl.BlockSpec(memory_space=pltpu.MemorySpace.SMEM),     # b_psi scalar
        ],
        out_specs=pl.BlockSpec((1, F_l, tp), lambda n, p: (n, 0, p)),
        compiler_params=pltpu.CompilerParams(
            dimension_semantics=("parallel", "parallel"),
            vmem_limit_bytes=vmem_limit),
    )(g_r, x_r, wg_t, wx_t, wpsi_t, bsum, bpsi_s)

    if HW_pad != HW:
        out_r = out_r[:, :, :HW]
    return out_r.reshape(N, F_l, H, W)


# ----------------------------- reference & params ---------------------------

def _reference(g, x, params):
    """Pure-JAX reference of the PyTorch forward (eval-mode BN)."""
    wg, bg = _fold_bn(params["wg"], params["bg"], params["bn_g_gamma"],
                      params["bn_g_beta"], params["bn_g_mean"], params["bn_g_var"])
    wx, bx = _fold_bn(params["wx"], params["bx"], params["bn_x_gamma"],
                      params["bn_x_beta"], params["bn_x_mean"], params["bn_x_var"])
    wpsi, bpsi = _fold_bn(params["wpsi"], params["bpsi"], params["bn_p_gamma"],
                          params["bn_p_beta"], params["bn_p_mean"], params["bn_p_var"])
    g1 = jnp.einsum("nchw,ck->nkhw", g, wg) + bg[None, :, None, None]
    x1 = jnp.einsum("nchw,ck->nkhw", x, wx) + bx[None, :, None, None]
    h = jnp.maximum(g1 + x1, 0.0)
    p = jnp.einsum("nkhw,ko->nohw", h, wpsi) + bpsi[None, :, None, None]
    psi = jax.nn.sigmoid(p)
    return x * psi


def init_params(key, F_g, F_l, F_int):
    """Deterministic synthetic parameters (PyTorch shapes, BN defaults)."""
    k1, k2, k3, k4, k5, k6 = jax.random.split(key, 6)
    wg = 0.1 * jax.random.normal(k1, (F_g, F_int), jnp.float32)
    bg = 0.1 * jax.random.normal(k2, (F_int,), jnp.float32)
    wx = 0.1 * jax.random.normal(k3, (F_l, F_int), jnp.float32)
    bx = 0.1 * jax.random.normal(k4, (F_int,), jnp.float32)
    wpsi = 0.1 * jax.random.normal(k5, (F_int, 1), jnp.float32)
    bpsi = 0.1 * jax.random.normal(k6, (1,), jnp.float32)
    ones = lambda n: jnp.ones((n,), jnp.float32)
    zeros = lambda n: jnp.zeros((n,), jnp.float32)
    return dict(
        wg=wg, bg=bg, wx=wx, bx=bx, wpsi=wpsi, bpsi=bpsi,
        bn_g_gamma=ones(F_int), bn_g_beta=zeros(F_int),
        bn_g_mean=zeros(F_int), bn_g_var=ones(F_int),
        bn_x_gamma=ones(F_int), bn_x_beta=zeros(F_int),
        bn_x_mean=zeros(F_int), bn_x_var=ones(F_int),
        bn_p_gamma=ones(1), bn_p_beta=zeros(1),
        bn_p_mean=zeros(1), bn_p_var=ones(1),
    )


# ----------------------------- self-test -------------------------------------

if __name__ == "__main__":
    N, F_g, F_l, F_int, H, W = 2, 4, 4, 8, 16, 16

    key = jax.random.PRNGKey(0)
    kg, kx, kp = jax.random.split(key, 3)
    g = jax.random.normal(kg, (N, F_g, H, W), jnp.float32)
    x = jax.random.normal(kx, (N, F_l, H, W), jnp.float32)
    params = init_params(kp, F_g, F_l, F_int)

    # Case 1: H*W divisible by 128 -> no pad, no slice, single tile per batch row.
    out = jax.block_until_ready(attention_block_pallas(g, x, params))
    ref = _reference(g, x, params)
    assert out.shape == (N, F_l, H, W)
    assert jnp.allclose(out, ref, atol=1e-5, rtol=1e-5), "mismatch vs reference"

    # Case 2: odd H*W (15*15=225) -> single full-extent pixel block, no pad/slice.
    H2 = W2 = 15
    g2 = jax.random.normal(kg, (N, F_g, H2, W2), jnp.float32)
    x2 = jax.random.normal(kx, (N, F_l, H2, W2), jnp.float32)
    out2 = jax.block_until_ready(attention_block_pallas(g2, x2, params))
    ref2 = _reference(g2, x2, params)
    assert out2.shape == (N, F_l, H2, W2)
    assert jnp.allclose(out2, ref2, atol=1e-5, rtol=1e-5), "mismatch (odd HW)"

    # Case 3: ragged final pixel block (H*W=384, tp forced to 256 via byte target)
    # exercises Pallas' masked boundary-block handling with no host pad/slice.
    H3, W3 = 16, 24
    g3 = jax.random.normal(kg, (N, F_g, H3, W3), jnp.float32)
    x3 = jax.random.normal(kx, (N, F_l, H3, W3), jnp.float32)
    out3 = jax.block_until_ready(
        attention_block_pallas(g3, x3, params, target_block_bytes=4096))
    ref3 = _reference(g3, x3, params)
    assert out3.shape == (N, F_l, H3, W3)
    assert jnp.allclose(out3, ref3, atol=1e-5, rtol=1e-5), "mismatch (ragged block)"

    print("KERNEL_OK")
</pallas_src>

<mosaic_0001>
module attributes {stable_mosaic.version = 11 : i64} {
  func.func @_attention_kernel(%arg0: i32, %arg1: i32, %arg2: memref<1x4x256xf32, #tpu.memory_space<vmem>>, %arg3: memref<1x4x256xf32, #tpu.memory_space<vmem>>, %arg4: memref<8x4xf32, #tpu.memory_space<vmem>>, %arg5: memref<8x4xf32, #tpu.memory_space<vmem>>, %arg6: memref<1x8xf32, #tpu.memory_space<vmem>>, %arg7: memref<8x1xf32, #tpu.memory_space<vmem>>, %arg8: memref<1xf32, #tpu.memory_space<smem>>, %arg9: memref<1x4x256xf32, #tpu.memory_space<vmem>>) attributes {dimension_semantics = [#tpu.dimension_semantics<parallel>, #tpu.dimension_semantics<parallel>], iteration_bounds = array<i64: 2, 1>, scalar_prefetch = 0 : i64, scratch_operands = 0 : i64, tpu.core_type = #tpu.core_type<tc>, window_params = [{transform_indices = @transform_0, window_bounds = array<i64: 1, 4, 256>}, {transform_indices = @transform_1, window_bounds = array<i64: 1, 4, 256>}, {pipeline_mode = #tpu.pipeline_mode<synchronous>, transform_indices = @transform_2, window_bounds = array<i64: 8, 4>}, {pipeline_mode = #tpu.pipeline_mode<synchronous>, transform_indices = @transform_3, window_bounds = array<i64: 8, 4>}, {pipeline_mode = #tpu.pipeline_mode<synchronous>, transform_indices = @transform_4, window_bounds = array<i64: 1, 8>}, {pipeline_mode = #tpu.pipeline_mode<synchronous>, transform_indices = @transform_5, window_bounds = array<i64: 8, 1>}, {transform_indices = @transform_6, window_bounds = array<i64: 1>}, {transform_indices = @transform_7, window_bounds = array<i64: 1, 4, 256>}]} {
    %c0 = arith.constant 0 : index
    %c0_0 = arith.constant 0 : index
    %c0_1 = arith.constant 0 : index
    %0 = vector.load %arg2[%c0, %c0_0, %c0_1] : memref<1x4x256xf32, #tpu.memory_space<vmem>>, vector<1x4x256xf32>
    %1 = vector.shape_cast %0 : vector<1x4x256xf32> to vector<4x256xf32>
    %c0_2 = arith.constant 0 : index
    %c0_3 = arith.constant 0 : index
    %c0_4 = arith.constant 0 : index
    %2 = vector.load %arg3[%c0_2, %c0_3, %c0_4] : memref<1x4x256xf32, #tpu.memory_space<vmem>>, vector<1x4x256xf32>
    %3 = vector.shape_cast %2 : vector<1x4x256xf32> to vector<4x256xf32>
    %c0_5 = arith.constant 0 : index
    %c0_6 = arith.constant 0 : index
    %4 = vector.load %arg4[%c0_5, %c0_6] : memref<8x4xf32, #tpu.memory_space<vmem>>, vector<8x4xf32>
    %cst = arith.constant dense<0.000000e+00> : vector<8x256xf32>
    %5 = tpu.matmul %4, %1, %cst {dimension_numbers = #tpu.dot_dimension_numbers<[1], [0], [0], [1], [0, 0, 1, 1], [], []>} : vector<8x4xf32>, vector<4x256xf32>, vector<8x256xf32> -> vector<8x256xf32>
    %c0_7 = arith.constant 0 : index
    %c0_8 = arith.constant 0 : index
    %6 = vector.load %arg5[%c0_7, %c0_8] : memref<8x4xf32, #tpu.memory_space<vmem>>, vector<8x4xf32>
    %cst_9 = arith.constant dense<0.000000e+00> : vector<8x256xf32>
    %7 = tpu.matmul %6, %3, %cst_9 {dimension_numbers = #tpu.dot_dimension_numbers<[1], [0], [0], [1], [0, 0, 1, 1], [], []>} : vector<8x4xf32>, vector<4x256xf32>, vector<8x256xf32> -> vector<8x256xf32>
    %8 = arith.addf %5, %7 : vector<8x256xf32>
    %c0_10 = arith.constant 0 : index
    %c0_11 = arith.constant 0 : index
    %9 = vector.load %arg7[%c0_10, %c0_11] : memref<8x1xf32, #tpu.memory_space<vmem>>, vector<8x1xf32>
    %10 = vector.broadcast %9 : vector<8x1xf32> to vector<8x256xf32>
    %11 = arith.addf %8, %10 : vector<8x256xf32>
    %cst_12 = arith.constant 0.000000e+00 : f32
    %12 = vector.broadcast %cst_12 : f32 to vector<8x256xf32>
    %13 = arith.maximumf %11, %12 : vector<8x256xf32>
    %c0_13 = arith.constant 0 : index
    %c0_14 = arith.constant 0 : index
    %14 = vector.load %arg6[%c0_13, %c0_14] : memref<1x8xf32, #tpu.memory_space<vmem>>, vector<1x8xf32>
    %cst_15 = arith.constant dense<0.000000e+00> : vector<1x256xf32>
    %15 = tpu.matmul %14, %13, %cst_15 {dimension_numbers = #tpu.dot_dimension_numbers<[1], [0], [0], [1], [0, 0, 1, 1], [], []>} : vector<1x8xf32>, vector<8x256xf32>, vector<1x256xf32> -> vector<1x256xf32>
    %c0_16 = arith.constant 0 : index
    %16 = memref.load %arg8[%c0_16] : memref<1xf32, #tpu.memory_space<smem>>
    %17 = vector.broadcast %16 : f32 to vector<1x256xf32>
    %18 = arith.addf %15, %17 : vector<1x256xf32>
    %19 = arith.negf %18 : vector<1x256xf32>
    %20 = math.exp %19 : vector<1x256xf32>
    %cst_17 = arith.constant 1.000000e+00 : f32
    %21 = vector.broadcast %cst_17 : f32 to vector<1x256xf32>
    %22 = arith.addf %21, %20 : vector<1x256xf32>
    %23 = arith.divf %21, %22 : vector<1x256xf32>
    %24 = vector.broadcast %23 : vector<1x256xf32> to vector<4x256xf32>
    %25 = arith.mulf %3, %24 : vector<4x256xf32>
    %c0_18 = arith.constant 0 : index
    %c0_19 = arith.constant 0 : index
    %c0_20 = arith.constant 0 : index
    %26 = vector.load %arg9[%c0_18, %c0_19, %c0_20] : memref<1x4x256xf32, #tpu.memory_space<vmem>>, vector<1x4x256xf32>
    %27 = vector.shape_cast %26 : vector<1x4x256xf32> to vector<4x256xf32>
    %28 = vector.shape_cast %25 : vector<4x256xf32> to vector<1x4x256xf32>
    tpu.vector_store %arg9[%c0_18, %c0_19, %c0_20], %28 {strides = array<i32>} : memref<1x4x256xf32, #tpu.memory_space<vmem>>, vector<1x4x256xf32>,
    return
  }
  func.func @transform_0(%arg0: i32, %arg1: i32) -> (i32, i32, i32) {
    %c0_i32 = arith.constant 0 : i32
    %c0_i32_0 = arith.constant 0 : i32
    return %arg0, %c0_i32, %arg1 : i32, i32, i32
  }
  func.func @transform_1(%arg0: i32, %arg1: i32) -> (i32, i32, i32) {
    %c0_i32 = arith.constant 0 : i32
    %c0_i32_0 = arith.constant 0 : i32
    return %arg0, %c0_i32, %arg1 : i32, i32, i32
  }
  func.func @transform_2(%arg0: i32, %arg1: i32) -> (i32, i32) {
    %c0_i32 = arith.constant 0 : i32
    %c0_i32_0 = arith.constant 0 : i32
    %c0_i32_1 = arith.constant 0 : i32
    return %c0_i32, %c0_i32_0 : i32, i32
  }
  func.func @transform_3(%arg0: i32, %arg1: i32) -> (i32, i32) {
    %c0_i32 = arith.constant 0 : i32
    %c0_i32_0 = arith.constant 0 : i32
    %c0_i32_1 = arith.constant 0 : i32
    return %c0_i32, %c0_i32_0 : i32, i32
  }
  func.func @transform_4(%arg0: i32, %arg1: i32) -> (i32, i32) {
    %c0_i32 = arith.constant 0 : i32
    %c0_i32_0 = arith.constant 0 : i32
    %c0_i32_1 = arith.constant 0 : i32
    return %c0_i32, %c0_i32_0 : i32, i32
  }
  func.func @transform_5(%arg0: i32, %arg1: i32) -> (i32, i32) {
    %c0_i32 = arith.constant 0 : i32
    %c0_i32_0 = arith.constant 0 : i32
    %c0_i32_1 = arith.constant 0 : i32
    return %c0_i32, %c0_i32_0 : i32, i32
  }
  func.func @transform_6(%arg0: i32, %arg1: i32) -> i32 {
    %c0_i32 = arith.constant 0 : i32
    %c0_i32_0 = arith.constant 0 : i32
    return %c0_i32 : i32
  }
  func.func @transform_7(%arg0: i32, %arg1: i32) -> (i32, i32, i32) {
    %c0_i32 = arith.constant 0 : i32
    %c0_i32_0 = arith.constant 0 : i32
    return %arg0, %c0_i32, %arg1 : i32, i32, i32
  }
}

</mosaic_0001>

<bundles_post_ra>
// kernel: attention_block_pallas.1
= control target key start
LH: loop header
LB: loop body
LE: loop exit
PB: predicated region body
PF: predicated region fallthrough
CT: control target
= control target key end

     0   :  { %s802_s26 = smov 0   ;;  %s804_s27 = smov 0   ;;  %s864_s0 = inlined_call_operand.vmem [shape: f32[2,4,256], index: 0, kind: input, shape index: {}]   ;;  %s865_s1 = inlined_call_operand.vmem [shape: f32[2,4,256], index: 1, kind: input, shape index: {}]   ;;  %s866_s2 = inlined_call_operand.vmem [shape: f32[8,4], index: 2, kind: input, shape index: {}]   ;;  %s867_s3 = inlined_call_operand.vmem [shape: f32[8,4], index: 3, kind: input, shape index: {}]   ;;  %s868_s4 = inlined_call_operand.vmem [shape: f32[1,8], index: 4, kind: input, shape index: {}]   ;;  %s869_s5 = inlined_call_operand.vmem [shape: f32[8,1], index: 5, kind: input, shape index: {}]   ;;  %s870_s6 = inlined_call_operand.<no memory space> [shape: f32[1], index: 6, kind: input, shape index: {}]   ;;  %s871_s7 = inlined_call_operand.vmem [shape: f32[2,4,256], index: 7, kind: output, shape index: {}]  }
   0x1   :  { %12 = sst [smem:[#allocation2]] %s870_s6  ;;  %s806_s28 = smov 0  }
   0x2 LB: > { %s30_s6 = sadd.s32 1, %s752_s27  ;;  %p676_p0 = scmp.ge.s32.totalorder %s756_s28, 1  ;;  %s756_s28 = sphi %s806_s28, %s18_s28   ;;  %s752_s27 = sphi %s804_s27, %s873_s27   ;;  %s748_s26 = sphi %s802_s26, %s872_s26  }
   0x3   : > { %p32_p1 = scmp.ge.s32.totalorder %s30_s6, 2  ;;  %p276_p2 = scmp.lt.s32.totalorder %s756_s28, 3 }
   0x5   : > { %s875_s6 = smov (%p32_p1, %s30_s6), 0  ;;  %p277_p3 = pnand %p676_p0, %p276_p2 }
   0x6   : > { %p326_p4 = scmp.lt.s32.totalorder (!%p277_p3), %s748_s26, 1  ;;  %s474_s21 = sld [smem:[#allocation2]] (!%p277_p3) }
   0x7   : > { %280 = sbr.rel (%p277_p3) target bundleno = 337 (0x151), region = 48 }
   0xc   : > { %v758_v0 = vmov 0   ;;  %v463_v1 = vld [vmem:[%s869_s5] sm:$0xff]  ;;  %s877_s26 = smov (!%p326_p4, %s748_s26), 1  ;;  %vm367_vm0 = vcmask 1043456   ;;  %vm363_vm1 = vcmask 31744   ;;  %vm476_vm2 = vcmask 64512  }
   0xd   : > { %725 = vset.pattern.permute.xlu0 %v758_v0  ;;  %s823_s8 = sshll.u32 %s877_s26, 3  ;;  %v358_v4 = vld [vmem:[%s867_s3] sm:$0xff]  ;;  %v475_v22 = vstv %s474_s21 }
   0xe   : > { %466 = vperm.xlu0 %725, %v463_v1   ;;  %s343_s11 = scalar_lea.vmem %s865_s1, %s823_s8  ;;  %s333_s14 = scalar_lea.vmem %s864_s0, %s823_s8  ;;  %v357_v7 = vld [vmem:[%s866_s2] sm:$0xff] }
   0xf   : > { %v829_v2 = vld [vmem:[%s343_s11] sm:$0xff]  ;;  %s353_s24 = scalar_lea.vmem %s871_s7, %s823_s8 }
  0x10   : > { %360 = vst [vmem:[#allocation1] ss:$2 sm:$0xff] %v829_v2  ;;  %v355_v3 = vld [vmem:[%s333_s14] sm:$0xff] }
  0x11   : > { %v473_v21 = vld [vmem:[%s868_s4] sm:$0x1] }
  0x17   : > { %v361_v5 = vld.sshfl [vmem:[#allocation1] sm:$0xff pattern:$0x75316420]  ;;  %v362_v6 = vld.sshfl [vmem:[#allocation1 + $0x8] sm:$0xff pattern:$0x75316420] }
  0x18   : > { %413 = vst [vmem:[#allocation1] ss:$2 sm:$0xff] %v355_v3  ;;  %683 = vmatpush.msk.msra.mxu0 %vm367_vm0, %v361_v5  ;;  %685 = vmatpush.msk.msra.mxu1 %vm367_vm0, %v362_v6 }
  0x19   : > { %684 = vmatmul.msk.f32.vlgmr.msra.gmra.mxu0 %vm363_vm1, %v358_v4  ;;  %686 = vmatmul.msk.f32.vlgmr.msra.gmra.mxu1 %vm363_vm1, %v358_v4 }
  0x1f   : > { %v414_v8 = vld.sshfl [vmem:[#allocation1] sm:$0xff pattern:$0x75316420]  ;;  %v415_v9 = vld.sshfl [vmem:[#allocation1 + $0x8] sm:$0xff pattern:$0x75316420] }
  0x20   : > { %687 = vmatpush.msk.msra.mxu2 %vm367_vm0, %v414_v8  ;;  %689 = vmatpush.msk.msra.mxu3 %vm367_vm0, %v415_v9 }
  0x21   : > { %688 = vmatmul.msk.f32.vlgmr.msra.gmra.mxu2 %vm363_vm1, %v357_v7  ;;  %690 = vmatmul.msk.f32.vlgmr.msra.gmra.mxu3 %vm363_vm1, %v357_v7 }
  0x80   : > { %v467_v12 = vpop.permute.xlu0 %466 }
  0x96   : > { %v389_v10 = vpop.f32.mrf.mxu0  ;;  %v409_v11 = vpop.f32.mrf.mxu1 }
  0xa4   : > { %v440_v13 = vpop.f32.mrf.mxu2  ;;  %v460_v14 = vpop.f32.mrf.mxu3 }
  0xa5   : > { %v441_v15 = vadd.f32 %v440_v13, %v389_v10  ;;  %v461_v16 = vadd.f32 %v460_v14, %v409_v11 }
  0xa7   : > { %v469_v17 = vadd.f32 %v467_v12, %v441_v15  ;;  %v470_v18 = vadd.f32 %v467_v12, %v461_v16 }
  0xa9   : > { %v471_v19 = vmax.f32 %v469_v17, 0.0  ;;  %v472_v20 = vmax.f32 %v470_v18, 0.0 }
  0xab   : > { %495 = vmatpush.msrb.mxu0 %v471_v19  ;;  %515 = vmatpush.msrb.mxu1 %v472_v20 }
  0xac   : > { %691 = vmatmul.msk.f32.vlgmr.msrb.gmra.mxu0 %vm476_vm2, %v473_v21  ;;  %692 = vmatmul.msk.f32.vlgmr.msrb.gmra.mxu1 %vm476_vm2, %v473_v21 }
 0x129   : > { %v497_v23 = vpop.f32.mrf.mxu0  ;;  %v517_v24 = vpop.f32.mrf.mxu1 }
 0x12a   : > { %v498_v25 = vadd.f32 %v497_v23, %v475_v22  ;;  %v518_v26 = vadd.f32 %v517_v24, %v475_v22 }
 0x12c   : > { %v693_v27 = vmul.f32 -1.442695, %v498_v25  ;;  %v694_v28 = vmul.f32 -1.442695, %v518_v26 }
 0x12e   : > { %726 = vpow2.f32 %v693_v27 }
 0x12f   : > { %728 = vpow2.f32 %v694_v28 }
 0x134   : > { %v727_v29 = vpop.eup %726 }
 0x135   : > { %v729_v30 = vpop.eup %728  ;;  %v526_v31 = vadd.f32 1.0, %v727_v29 }
 0x136   : > { %v527_v32 = vadd.f32 1.0, %v729_v30 }
 0x137   : > { %730 = vrcp.f32 %v526_v31  ;;  %v539_v40 = vand.u32 2147483648, %v526_v31  ;;  %v537_v42 = vand.u32 2147483647, %v526_v31  ;;  %vm533_vm5 = vweird.f32 %v526_v31 }
 0x138   : > { %732 = vrcp.f32 %v527_v32  ;;  %v554_v41 = vand.u32 2147483648, %v527_v32  ;;  %v552_v44 = vand.u32 2147483647, %v527_v32  ;;  %vm548_vm7 = vweird.f32 %v527_v32 }
 0x139   : > { %v540_v48 = vor.u32 1.1754944e-38, %v539_v40  ;;  %vm538_vm9 = vcmp.eq.f32.partialorder %v537_v42, 8.507059e+37 }
 0x13a   : > { %v555_v49 = vor.u32 1.1754944e-38, %v554_v41  ;;  %vm553_vm10 = vcmp.eq.f32.partialorder %v552_v44, 8.507059e+37 }
 0x13d   : > { %v731_v33 = vpop.eup %730 }
 0x13e   : > { %v733_v34 = vpop.eup %732  ;;  %v529_v35 = vmul.f32 %v731_v33, %v526_v31  ;;  %vm534_vm3 = vweird.f32 %v731_v33 }
 0x13f   : > { %v544_v36 = vmul.f32 %v733_v34, %v527_v32  ;;  %vm549_vm4 = vweird.f32 %v733_v34  ;;  %vm535_vm6 = vmor %vm533_vm5, %vm534_vm3 }
 0x140   : > { %v530_v37 = vsub.f32 1.0, %v529_v35  ;;  %vm550_vm8 = vmor %vm548_vm7, %vm549_vm4 }
 0x141   : > { %v545_v38 = vsub.f32 1.0, %v544_v36 }
 0x142   : > { %v531_v39 = vmul.f32 %v731_v33, %v530_v37 }
 0x143   : > { %v546_v43 = vmul.f32 %v733_v34, %v545_v38 }
 0x144   : > { %v532_v45 = vadd.f32 %v731_v33, %v531_v39 }
 0x145   : > { %v547_v46 = vadd.f32 %v733_v34, %v546_v43 }
 0x146   : > { %v536_v47 = vsel %vm535_vm6, %v731_v33, %v532_v45 }
 0x147   : > { %v551_v50 = vsel %vm550_vm8, %v733_v34, %v547_v46  ;;  %v541_v51 = vsel %vm538_vm9, %v540_v48, %v536_v47 }
 0x148   : > { %v556_v52 = vsel %vm553_vm10, %v555_v49, %v551_v50  ;;  %v558_v54 = vperm.slane %v541_v51, 0 }
 0x149   : > { %v559_v53 = vperm.slane %v556_v52, 0 }
 0x14b   : > { %v562_v55 = vrot.slane %v559_v53, 4 }
 0x14d   : > { %v563_v56 = vsel %vm367_vm0, %v558_v54, %v562_v55 }
 0x14e   : > { %v565_v57 = vmul.f32 %v563_v56, %v829_v2 }
 0x150   : > { %566 = vst [vmem:[%s353_s24] sm:$0xff] %v565_v57 }
 0x151 PF: > { %s18_s28 = sadd.s32 1, %s756_s28   ;;  %s872_s26 = smov %s752_s27 }
 0x152   : > { %p15_p5 = scmp.ge.s32.totalorder %s18_s28, 4   ;;  %s873_s27 = smov %s875_s6 }
 0x154   :  { %17 = sbr.rel (!%p15_p5) target bundleno = 2 (0x2), region = 81 }

</bundles_post_ra>
